<compile_context>
chip_gen: v6e
topology: v6e:2x2x1
jax: 0.10.0
libtpu: 0.0.40
codegen_flags: <defaults>
</compile_context>

<pallas_src>
import numpy as np
import jax
import jax.numpy as jnp
from jax import lax
from jax.experimental import pallas as pl
from jax.experimental.pallas import tpu as pltpu

N_BATCH = 2
H = W = 8            # input spatial: conv(k=3, valid) 8->6, maxpool(2) 6->3
C_OUT = 6            # conv1 out channels
K = 9                # 3x3 conv patch (in_channels = 1)
Q = 9                # 3x3 pooled output positions
D = 4                # 2x2 max-pool window offsets
F_IN = C_OUT * Q     # 54
F_PAD = 128          # per-offset slab padded to one full vreg lane group
F_OUT = 10


def _build_conv_selector():
    """Constant 0/1 tensor S[d, p, q, k] = 1 iff input pixel p is element k of the
    3x3 patch feeding pooled position q at pool-window offset d."""
    S = np.zeros((D, H * W, Q, K), dtype=np.float32)
    for dh in range(2):
        for dw in range(2):
            d = dh * 2 + dw
            for ph in range(3):
                for pw in range(3):
                    q = ph * 3 + pw
                    for kh in range(3):
                        for kw in range(3):
                            p = (2 * ph + dh + kh) * W + (2 * pw + dw + kw)
                            S[d, p, q, kh * 3 + kw] = 1.0
    return S


_S_CONV = jnp.asarray(_build_conv_selector())   # (D, 64, Q, K), trace-time constant


def simple_cnn_kernel(x_ref, wc_ref, bc_ref, wf_ref, bf_ref, out_ref):
    """Fused conv3x3 + bias + ReLU + maxpool(2) + Linear(54 -> 10).

    x_ref:   (block_n, 64)        flattened 8x8 input image (pixel p = i*8 + j)
    wc_ref:  (64, 4*128)          conv-as-GEMM weights; slab d occupies lanes
                                  [d*128, (d+1)*128), columns 54..127 of each slab zero
    bc_ref:  (1, 128)             conv bias: column q*6+c holds conv_b[c], rest zero
    wf_ref:  (128, 10)            fc weight remapped to q-major flatten order, zero-padded rows
    bf_ref:  (1, 10)              fc bias
    out_ref: (block_n, 10)
    """
    x = x_ref[...]
    # One MXU matmul covering all four 2x2 pool-window offsets side by side.
    m = jnp.dot(x, wc_ref[...], preferred_element_type=jnp.float32)     # (bn, 512)
    # 2x2 max-pool = max over the four 128-lane-aligned slabs (pure VPU, no relayout).
    pooled = jnp.maximum(
        jnp.maximum(m[:, 0:F_PAD],         m[:, F_PAD:2 * F_PAD]),
        jnp.maximum(m[:, 2 * F_PAD:3 * F_PAD], m[:, 3 * F_PAD:4 * F_PAD]))
    # Bias (d-invariant) and monotone ReLU commute with the max -> apply once.
    pooled = jnp.maximum(pooled + bc_ref[...], 0.0)                      # (bn, 128)
    # Final fc: one aligned (bn,128)x(128,10) matmul; padded rows are zero so exact.
    out_ref[...] = (jnp.dot(pooled, wf_ref[...], preferred_element_type=jnp.float32)
                    + bf_ref[...])


def simple_cnn_forward(x, conv_w, conv_b, fc_w, fc_b):
    n = x.shape[0]
    x_flat = x.reshape(n, H * W).astype(jnp.float32)                     # (N, 64)

    # --- parameter repacking (tiny; constant-foldable / cacheable under jit) ---
    hi = lax.Precision.HIGHEST  # selector entries are 0/1: keep repack bit-exact
    wk = conv_w.reshape(C_OUT, K).astype(jnp.float32)                    # wk[c, kh*3+kw]
    wc = jnp.einsum("dpqk,ck->dpqc", _S_CONV, wk,
                    precision=hi).reshape(D, H * W, F_IN)                # (4, 64, 54)
    wc = jnp.pad(wc, ((0, 0), (0, 0), (0, F_PAD - F_IN)))                # (4, 64, 128)
    wc_all = wc.transpose(1, 0, 2).reshape(H * W, D * F_PAD)             # (64, 512)

    bc = jnp.pad(jnp.tile(conv_b.astype(jnp.float32), Q),
                 (0, F_PAD - F_IN)).reshape(1, F_PAD)                    # col q*6+c -> b[c]
    # torch flatten is f = c*9 + q; the kernel's pooled layout is q*6 + c.
    wf = (fc_w.T.reshape(C_OUT, Q, F_OUT).transpose(1, 0, 2)
          .reshape(F_IN, F_OUT).astype(jnp.float32))
    wf = jnp.pad(wf, ((0, F_PAD - F_IN), (0, 0)))                        # (128, 10)
    bf = fc_b.reshape(1, F_OUT).astype(jnp.float32)

    # Batch tiling: one block for small N; 256-row blocks (pipelined, megacore-
    # parallel) for large N.  Per-block VMEM (double-buffered x + weights + out)
    # stays well under v7x's 64 MiB.
    block_n = 256 if (n >= 512 and n % 256 == 0) else n
    grid = (n // block_n,)

    return pl.pallas_call(
        simple_cnn_kernel,
        out_shape=jax.ShapeDtypeStruct((n, F_OUT), jnp.float32),
        grid=grid,
        in_specs=[
            pl.BlockSpec((block_n, H * W), lambda i: (i, 0)),
            pl.BlockSpec((H * W, D * F_PAD), lambda i: (0, 0)),   # weights: whole array
            pl.BlockSpec((1, F_PAD), lambda i: (0, 0)),
            pl.BlockSpec((F_PAD, F_OUT), lambda i: (0, 0)),
            pl.BlockSpec((1, F_OUT), lambda i: (0, 0)),
        ],
        out_specs=pl.BlockSpec((block_n, F_OUT), lambda i: (i, 0)),
        compiler_params=pltpu.CompilerParams(
            dimension_semantics=("parallel",)),
    )(x_flat, wc_all, bc, wf, bf)


def reference_forward(x, conv_w, conv_b, fc_w, fc_b):
    """Pure-JAX reference matching the PyTorch forward exactly."""
    conv = lax.conv_general_dilated(
        x, conv_w, window_strides=(1, 1), padding="VALID",
        dimension_numbers=("NCHW", "OIHW", "NCHW"),
        precision=lax.Precision.HIGHEST)
    conv = jnp.maximum(conv + conv_b[None, :, None, None], 0.0)
    pooled = lax.reduce_window(
        conv, -jnp.inf, lax.max,
        window_dimensions=(1, 1, 2, 2), window_strides=(1, 1, 2, 2),
        padding="VALID")
    flat = pooled.reshape(x.shape[0], F_IN)
    return jnp.dot(flat, fc_w.T, precision=lax.Precision.HIGHEST) + fc_b


if __name__ == "__main__":
    key = jax.random.PRNGKey(0)
    kx, kw1, kb1, kw2, kb2 = jax.random.split(key, 5)

    # Deterministic synthetic inputs / parameters (shapes from SimpleCNN.__init__).
    x = jax.random.normal(kx, (N_BATCH, 1, H, W), dtype=jnp.float32)
    conv_w = jax.random.normal(kw1, (C_OUT, 1, 3, 3), dtype=jnp.float32) * 0.2
    conv_b = jax.random.normal(kb1, (C_OUT,), dtype=jnp.float32) * 0.1
    fc_w = jax.random.normal(kw2, (F_OUT, F_IN), dtype=jnp.float32) * 0.1
    fc_b = jax.random.normal(kb2, (F_OUT,), dtype=jnp.float32) * 0.1

    out = simple_cnn_forward(x, conv_w, conv_b, fc_w, fc_b)
    out = jax.block_until_ready(out)

    ref = reference_forward(x, conv_w, conv_b, fc_w, fc_b)
    assert out.shape == (N_BATCH, F_OUT), out.shape
    # Tolerance covers MXU f32 pass-decomposition differences vs. the XLA reference.
    assert jnp.allclose(out, ref, atol=2e-3, rtol=2e-3), (out, ref)
    print("KERNEL_OK")
</pallas_src>

<mosaic_0001>
module attributes {stable_mosaic.version = 11 : i64} {
  func.func @simple_cnn_kernel(%arg0: i32, %arg1: memref<2x64xf32, #tpu.memory_space<vmem>>, %arg2: memref<64x512xf32, #tpu.memory_space<vmem>>, %arg3: memref<1x128xf32, #tpu.memory_space<vmem>>, %arg4: memref<128x10xf32, #tpu.memory_space<vmem>>, %arg5: memref<1x10xf32, #tpu.memory_space<vmem>>, %arg6: memref<2x10xf32, #tpu.memory_space<vmem>>) attributes {dimension_semantics = [#tpu.dimension_semantics<parallel>], iteration_bounds = array<i64: 1>, scalar_prefetch = 0 : i64, scratch_operands = 0 : i64, tpu.core_type = #tpu.core_type<tc>, window_params = [{transform_indices = @transform_0, window_bounds = array<i64: 2, 64>}, {pipeline_mode = #tpu.pipeline_mode<synchronous>, transform_indices = @transform_1, window_bounds = array<i64: 64, 512>}, {pipeline_mode = #tpu.pipeline_mode<synchronous>, transform_indices = @transform_2, window_bounds = array<i64: 1, 128>}, {pipeline_mode = #tpu.pipeline_mode<synchronous>, transform_indices = @transform_3, window_bounds = array<i64: 128, 10>}, {pipeline_mode = #tpu.pipeline_mode<synchronous>, transform_indices = @transform_4, window_bounds = array<i64: 1, 10>}, {transform_indices = @transform_5, window_bounds = array<i64: 2, 10>}]} {
    %c0 = arith.constant 0 : index
    %c0_0 = arith.constant 0 : index
    %0 = vector.load %arg1[%c0, %c0_0] : memref<2x64xf32, #tpu.memory_space<vmem>>, vector<2x64xf32>
    %c0_1 = arith.constant 0 : index
    %c0_2 = arith.constant 0 : index
    %1 = vector.load %arg2[%c0_1, %c0_2] : memref<64x512xf32, #tpu.memory_space<vmem>>, vector<64x512xf32>
    %cst = arith.constant dense<0.000000e+00> : vector<2x512xf32>
    %2 = tpu.matmul %0, %1, %cst {dimension_numbers = #tpu.dot_dimension_numbers<[1], [0], [0], [1], [0, 0, 1, 1], [], []>} : vector<2x64xf32>, vector<64x512xf32>, vector<2x512xf32> -> vector<2x512xf32>
    %3 = vector.extract_strided_slice %2 {offsets = [0, 0], sizes = [2, 128], strides = [1, 1]} : vector<2x512xf32> to vector<2x128xf32>
    %4 = vector.extract_strided_slice %2 {offsets = [0, 128], sizes = [2, 128], strides = [1, 1]} : vector<2x512xf32> to vector<2x128xf32>
    %5 = arith.maximumf %3, %4 : vector<2x128xf32>
    %6 = vector.extract_strided_slice %2 {offsets = [0, 256], sizes = [2, 128], strides = [1, 1]} : vector<2x512xf32> to vector<2x128xf32>
    %7 = vector.extract_strided_slice %2 {offsets = [0, 384], sizes = [2, 128], strides = [1, 1]} : vector<2x512xf32> to vector<2x128xf32>
    %8 = arith.maximumf %6, %7 : vector<2x128xf32>
    %9 = arith.maximumf %5, %8 : vector<2x128xf32>
    %c0_3 = arith.constant 0 : index
    %c0_4 = arith.constant 0 : index
    %10 = vector.load %arg3[%c0_3, %c0_4] : memref<1x128xf32, #tpu.memory_space<vmem>>, vector<1x128xf32>
    %11 = vector.broadcast %10 : vector<1x128xf32> to vector<2x128xf32>
    %12 = arith.addf %9, %11 : vector<2x128xf32>
    %cst_5 = arith.constant 0.000000e+00 : f32
    %13 = vector.broadcast %cst_5 : f32 to vector<2x128xf32>
    %14 = arith.maximumf %12, %13 : vector<2x128xf32>
    %c0_6 = arith.constant 0 : index
    %c0_7 = arith.constant 0 : index
    %15 = vector.load %arg4[%c0_6, %c0_7] : memref<128x10xf32, #tpu.memory_space<vmem>>, vector<128x10xf32>
    %cst_8 = arith.constant dense<0.000000e+00> : vector<2x10xf32>
    %16 = tpu.matmul %14, %15, %cst_8 {dimension_numbers = #tpu.dot_dimension_numbers<[1], [0], [0], [1], [0, 0, 1, 1], [], []>} : vector<2x128xf32>, vector<128x10xf32>, vector<2x10xf32> -> vector<2x10xf32>
    %c0_9 = arith.constant 0 : index
    %c0_10 = arith.constant 0 : index
    %17 = vector.load %arg5[%c0_9, %c0_10] : memref<1x10xf32, #tpu.memory_space<vmem>>, vector<1x10xf32>
    %18 = vector.broadcast %17 : vector<1x10xf32> to vector<2x10xf32>
    %19 = arith.addf %16, %18 : vector<2x10xf32>
    %c0_11 = arith.constant 0 : index
    %c0_12 = arith.constant 0 : index
    %20 = vector.load %arg6[%c0_11, %c0_12] : memref<2x10xf32, #tpu.memory_space<vmem>>, vector<2x10xf32>
    tpu.vector_store %arg6[%c0_11, %c0_12], %19 {strides = array<i32>} : memref<2x10xf32, #tpu.memory_space<vmem>>, vector<2x10xf32>,
    return
  }
  func.func @transform_0(%arg0: i32) -> (i32, i32) {
    %c0_i32 = arith.constant 0 : i32
    %c0_i32_0 = arith.constant 0 : i32
    return %arg0, %c0_i32 : i32, i32
  }
  func.func @transform_1(%arg0: i32) -> (i32, i32) {
    %c0_i32 = arith.constant 0 : i32
    %c0_i32_0 = arith.constant 0 : i32
    %c0_i32_1 = arith.constant 0 : i32
    return %c0_i32, %c0_i32_0 : i32, i32
  }
  func.func @transform_2(%arg0: i32) -> (i32, i32) {
    %c0_i32 = arith.constant 0 : i32
    %c0_i32_0 = arith.constant 0 : i32
    %c0_i32_1 = arith.constant 0 : i32
    return %c0_i32, %c0_i32_0 : i32, i32
  }
  func.func @transform_3(%arg0: i32) -> (i32, i32) {
    %c0_i32 = arith.constant 0 : i32
    %c0_i32_0 = arith.constant 0 : i32
    %c0_i32_1 = arith.constant 0 : i32
    return %c0_i32, %c0_i32_0 : i32, i32
  }
  func.func @transform_4(%arg0: i32) -> (i32, i32) {
    %c0_i32 = arith.constant 0 : i32
    %c0_i32_0 = arith.constant 0 : i32
    %c0_i32_1 = arith.constant 0 : i32
    return %c0_i32, %c0_i32_0 : i32, i32
  }
  func.func @transform_5(%arg0: i32) -> (i32, i32) {
    %c0_i32 = arith.constant 0 : i32
    %c0_i32_0 = arith.constant 0 : i32
    return %arg0, %c0_i32 : i32, i32
  }
}

</mosaic_0001>

<bundles_post_ra>
// kernel: tpu_custom_call.1
= control target key start
LH: loop header
LB: loop body
LE: loop exit
PB: predicated region body
PF: predicated region fallthrough
CT: control target
= control target key end

     0   :  { %10 = vsyncpa [#allocation3], 0  ;;  %s562_s0 = inlined_call_operand.vmem [shape: f32[2,64], index: 0, kind: input, shape index: {}]   ;;  %s563_s1 = inlined_call_operand.hbm [shape: f32[64,512], index: 1, kind: input, shape index: {}]   ;;  %s564_s2 = inlined_call_operand.vmem [shape: f32[1,128], index: 2, kind: input, shape index: {}]   ;;  %s565_s3 = inlined_call_operand.vmem [shape: f32[128,10], index: 3, kind: input, shape index: {}]   ;;  %s566_s4 = inlined_call_operand.vmem [shape: f32[1,10], index: 4, kind: input, shape index: {}]   ;;  %s567_s5 = inlined_call_operand.hbm [shape: f32[2,10], index: 5, kind: output, shape index: {}]  }
   0x1   :  { %11 = vsyncpa [#allocation4], 0  ;;  %s442_s18 = smov [#allocation2]  }
   0x2   :  { %s19_s19 = sshll.u32 %s442_s18, 4  ;;  %s20_s19 = int_to_ptr.vmem [resolvable:$true] %s19_s19 }
   0x3   :  { %s406_s20 = scalar_lea.vmem %s20_s19, 4096  ;;  %p411_p1 = scmp.lt.s32.totalorder %s20_s19, %s20_s19 }
   0x4   :  { %p407_p0 = scmp.ne.s32.totalorder %s20_s19, %s406_s20  ;;  %p412_p2 = scmp.lt.s32.totalorder %s406_s20, %s406_s20 }
   0x6   :  { %p413_p3 = por %p412_p2, %p411_p1 }
   0x8   :  { %p414_p4 = pnand %p413_p3, %p407_p0 }
   0xa   :  { %417 = shalt.err (!%p414_p4)
}
   0xb   :  { %s443_s21 = smov 512   ;;  %s444_s22 = smov 32  }
   0xc   :  { %25 = dma.hbm_to_vmem [thread:$0]  %s563_s1, 4096, %s20_s19, [#allocation3], %s443_s21, %s443_s21, %s444_s22  }
   0xd   :  { %438 = dma.done.wait [#allocation3], 4096  }
   0xe   :  { %439 = vsyncadd [#allocation3], 4294963200  ;;  %v445_v0 = vmov 0.0   ;;  %v65_v1 = vld [vmem:[#allocation2 + $0xe8] sm:$0xff]  ;;  %v64_v2 = vld [vmem:[#allocation2 + $0xe0] sm:$0xff]  ;;  %vm68_vm0 = vcmask 523264  }
   0xf   :  { %136 = vmatprep.mubr.f32.mxu1 %v445_v0  ;;  %357 = vmatprep.subr.mxu0 %v445_v0  ;;  %v61_v3 = vld [vmem:[#allocation2 + $0xc8] sm:$0xff]  ;;  %v60_v4 = vld [vmem:[#allocation2 + $0xc0] sm:$0xff]  ;;  %v241_v15 = vld [vmem:[%s565_s3 + $0x78] sm:$0xff]  ;;  %vm446_vm1 = vmmov 0   ;;  %s447_s8 = smov [#allocation5]   ;;  %vm319_vm2 = vcmask 74752  }
  0x10   :  { %88 = vmatprep.subr.mxu1 %v65_v1  ;;  %v57_v5 = vld [vmem:[#allocation2 + $0xa8] sm:$0xff]  ;;  %v56_v6 = vld [vmem:[#allocation2 + $0xa0] sm:$0xff]  ;;  %v240_v16 = vld [vmem:[%s565_s3 + $0x70] sm:$0xff]  ;;  %358 = vmatpush3.msra.mxu0 %v241_v15  ;;  %s327_s9 = sshll.u32 %s447_s8, 4  ;;  %s328_s9 = int_to_ptr.vmem [resolvable:$true] %s327_s9 }
  0x11   :  { %89 = vmatpush1.msra.mxu1 %v64_v2  ;;  %v53_v7 = vld [vmem:[#allocation2 + $0x88] sm:$0xff]  ;;  %v52_v8 = vld [vmem:[#allocation2 + $0x80] sm:$0xff]  ;;  %359 = vmatprep.subr.mxu0 %v445_v0  ;;  %v67_v20 = vld [vmem:[#allocation2 + $0xf8] sm:$0xff]  ;;  %s418_s10 = scalar_lea.vmem %s328_s9, 32  ;;  %p423_p6 = scmp.lt.s32.totalorder %s328_s9, %s328_s9 }
  0x12   :  { %90 = vmatprep.subr.mxu1 %v61_v3  ;;  %v49_v9 = vld [vmem:[#allocation2 + $0x68] sm:$0xff]  ;;  %v48_v10 = vld [vmem:[#allocation2 + $0x60] sm:$0xff]  ;;  %360 = vmatpush3.msra.mxu0 %v240_v16  ;;  %v66_v21 = vld [vmem:[#allocation2 + $0xf0] sm:$0xff]  ;;  %p419_p5 = scmp.ne.s32.totalorder %s328_s9, %s418_s10  ;;  %p424_p7 = scmp.lt.s32.totalorder %s418_s10, %s418_s10 }
  0x13   :  { %91 = vmatpush1.msra.mxu1 %v60_v4  ;;  %v45_v11 = vld [vmem:[#allocation2 + $0x48] sm:$0xff]  ;;  %v44_v12 = vld [vmem:[#allocation2 + $0x40] sm:$0xff]  ;;  %361 = vmatprep.subr.mxu0 %v445_v0  ;;  %v63_v22 = vld [vmem:[#allocation2 + $0xd8] sm:$0xff] }
  0x14   :  { %92 = vmatprep.subr.mxu1 %v57_v5  ;;  %v41_v13 = vld [vmem:[#allocation2 + $0x28] sm:$0xff]  ;;  %v40_v14 = vld [vmem:[#allocation2 + $0x20] sm:$0xff]  ;;  %v62_v23 = vld [vmem:[#allocation2 + $0xd0] sm:$0xff]  ;;  %389 = vmatprep.mubr.msk.f32.mxu0 %vm446_vm1, %v445_v0  ;;  %p425_p8 = por %p424_p7, %p423_p6 }
  0x15   :  { %93 = vmatpush1.msra.mxu1 %v56_v6  ;;  %v37_v17 = vld [vmem:[#allocation2 + $0x8] sm:$0xff]  ;;  %v36_v18 = vld [vmem:[#allocation2] sm:$0xff]  ;;  %v59_v24 = vld [vmem:[#allocation2 + $0xb8] sm:$0xff] }
  0x16   :  { %94 = vmatprep.subr.mxu1 %v53_v7  ;;  %v35_v19 = vld [vmem:[%s562_s0] sm:$0x3]  ;;  %v58_v25 = vld [vmem:[#allocation2 + $0xb0] sm:$0xff]  ;;  %v55_v26 = vld [vmem:[#allocation2 + $0x98] sm:$0xff]  ;;  %p426_p9 = pnand %p425_p8, %p419_p5 }
  0x17   :  { %95 = vmatpush1.msra.mxu1 %v52_v8  ;;  %v54_v27 = vld [vmem:[#allocation2 + $0x90] sm:$0xff]  ;;  %v51_v28 = vld [vmem:[#allocation2 + $0x78] sm:$0xff]  ;;  %v239_v36 = vld [vmem:[%s565_s3 + $0x68] sm:$0xff] }
  0x18   :  { %96 = vmatprep.subr.mxu1 %v49_v9  ;;  %v50_v29 = vld [vmem:[#allocation2 + $0x70] sm:$0xff]  ;;  %v47_v30 = vld [vmem:[#allocation2 + $0x58] sm:$0xff]  ;;  %362 = vmatpush3.msra.mxu0 %v239_v36  ;;  %v238_v37 = vld [vmem:[%s565_s3 + $0x60] sm:$0xff] }
  0x19   :  { %97 = vmatpush1.msra.mxu1 %v48_v10  ;;  %v46_v31 = vld [vmem:[#allocation2 + $0x50] sm:$0xff]  ;;  %v43_v32 = vld [vmem:[#allocation2 + $0x38] sm:$0xff]  ;;  %363 = vmatprep.subr.mxu0 %v445_v0  ;;  %v235_v40 = vld [vmem:[%s565_s3 + $0x48] sm:$0xff] }
  0x1a   :  { %98 = vmatprep.subr.mxu1 %v45_v11  ;;  %v42_v33 = vld [vmem:[#allocation2 + $0x30] sm:$0xff]  ;;  %v39_v34 = vld [vmem:[#allocation2 + $0x18] sm:$0xff]  ;;  %364 = vmatpush3.msra.mxu0 %v238_v37  ;;  %v234_v41 = vld [vmem:[%s565_s3 + $0x40] sm:$0xff] }
  0x1b   :  { %99 = vmatpush1.msra.mxu1 %v44_v12  ;;  %v38_v35 = vld [vmem:[#allocation2 + $0x10] sm:$0xff]  ;;  %365 = vmatprep.subr.mxu0 %v445_v0  ;;  %v237_v38 = vld [vmem:[%s565_s3 + $0x58] sm:$0xff]  ;;  %v231_v44 = vld [vmem:[%s565_s3 + $0x28] sm:$0xff] }
  0x1c   :  { %100 = vmatprep.subr.mxu1 %v41_v13  ;;  %v236_v39 = vld [vmem:[%s565_s3 + $0x50] sm:$0xff]  ;;  %366 = vmatpush3.msra.mxu0 %v237_v38  ;;  %v233_v42 = vld [vmem:[%s565_s3 + $0x38] sm:$0xff]  ;;  %v230_v45 = vld [vmem:[%s565_s3 + $0x20] sm:$0xff] }
  0x1d   :  { %101 = vmatpush1.msra.mxu1 %v40_v14  ;;  %367 = vmatprep.subr.mxu0 %v445_v0  ;;  %v232_v43 = vld [vmem:[%s565_s3 + $0x30] sm:$0xff]  ;;  %v229_v46 = vld [vmem:[%s565_s3 + $0x18] sm:$0xff]  ;;  %v227_v48 = vld [vmem:[%s565_s3 + $0x8] sm:$0xff] }
  0x1e   :  { %102 = vmatprep.subr.mxu1 %v37_v17  ;;  %368 = vmatpush3.msra.mxu0 %v236_v39  ;;  %v228_v47 = vld [vmem:[%s565_s3 + $0x10] sm:$0xff]  ;;  %v226_v49 = vld [vmem:[%s565_s3] sm:$0xff] }
  0x1f   :  { %103 = vmatpush1.msra.mxu1 %v36_v18  ;;  %369 = vmatprep.subr.mxu0 %v445_v0  ;;  %v338_v56 = vld [vmem:[%s564_s2] ss:$0 sm:$0xff] }
  0x20   :  { %336 = vmatmul.mubr.msk.f32.vlgmr.msra.gmra.mxu1 %vm68_vm0, %v35_v19  ;;  %159 = vmatprep.subr.mxu1 %v67_v20  ;;  %v339_v60 = vld [vmem:[%s566_s4] ss:$0 sm:$0xff] }
  0x21   :  { %160 = vmatpush1.msra.mxu1 %v66_v21  ;;  %207 = vmatprep.mubr.f32.mxu1 %v445_v0 }
  0x22   :  { %161 = vmatprep.subr.mxu1 %v63_v22  ;;  %370 = vmatpush3.msra.mxu0 %v235_v40 }
  0x23   :  { %162 = vmatpush1.msra.mxu1 %v62_v23  ;;  %371 = vmatprep.subr.mxu0 %v445_v0 }
  0x24   :  { %163 = vmatprep.subr.mxu1 %v59_v24  ;;  %372 = vmatpush3.msra.mxu0 %v234_v41 }
  0x25   :  { %164 = vmatpush1.msra.mxu1 %v58_v25  ;;  %373 = vmatprep.subr.mxu0 %v445_v0 }
  0x26   :  { %165 = vmatprep.subr.mxu1 %v55_v26  ;;  %374 = vmatpush3.msra.mxu0 %v233_v42 }
  0x27   :  { %166 = vmatpush1.msra.mxu1 %v54_v27  ;;  %375 = vmatprep.subr.mxu0 %v445_v0 }
  0x28   :  { %167 = vmatprep.subr.mxu1 %v51_v28  ;;  %376 = vmatpush3.msra.mxu0 %v232_v43 }
  0x29   :  { %168 = vmatpush1.msra.mxu1 %v50_v29  ;;  %377 = vmatprep.subr.mxu0 %v445_v0 }
  0x2a   :  { %169 = vmatprep.subr.mxu1 %v47_v30  ;;  %378 = vmatpush3.msra.mxu0 %v231_v44 }
  0x2b   :  { %170 = vmatpush1.msra.mxu1 %v46_v31  ;;  %379 = vmatprep.subr.mxu0 %v445_v0 }
  0x2c   :  { %171 = vmatprep.subr.mxu1 %v43_v32  ;;  %380 = vmatpush3.msra.mxu0 %v230_v45 }
  0x2d   :  { %172 = vmatpush1.msra.mxu1 %v42_v33  ;;  %381 = vmatprep.subr.mxu0 %v445_v0 }
  0x2e   :  { %173 = vmatprep.subr.mxu1 %v39_v34  ;;  %382 = vmatpush3.msra.mxu0 %v229_v46 }
  0x2f   :  { %174 = vmatpush1.msra.mxu1 %v38_v35  ;;  %383 = vmatprep.subr.mxu0 %v445_v0 }
  0x30   :  { %337 = vmatmul.mubr.msk.f32.vlgmr.msra.gmra.mxu1 %vm68_vm0, %v35_v19  ;;  %384 = vmatpush3.msra.mxu0 %v228_v47 }
  0x31   :  { %385 = vmatprep.subr.mxu0 %v445_v0 }
  0x32   :  { %386 = vmatpush3.msra.mxu0 %v227_v48 }
  0x33   :  { %387 = vmatprep.subr.mxu0 %v445_v0 }
  0x34   :  { %388 = vmatpush3.msra.mxu0 %v226_v49 }
  0xe0   :  { %v138_v50 = vpop.f32.mrf.mxu1 }
  0xe2   :  { %v140_v51 = vpop.f32.mrf.mxu1 }
  0xe3   :  { %v214_v54 = vmax.f32 %v138_v50, %v140_v51 }
  0xf0   :  { %v209_v52 = vpop.f32.mrf.mxu1 }
  0xf2   :  { %v211_v53 = vpop.f32.mrf.mxu1 }
  0xf3   :  { %v215_v55 = vmax.f32 %v209_v52, %v211_v53 }
  0xf5   :  { %v216_v57 = vmax.f32 %v214_v54, %v215_v55 }
  0xf7   :  { %v224_v58 = vadd.f32 %v338_v56, %v216_v57 }
  0xf9   :  { %v225_v59 = vmax.f32 %v224_v58, 0.0 }
  0xfb   :  { %390 = vmatmul.mubr.f32.vlgmr.msra.gmra.mxu0 %v225_v59 }
 0x1bb   :  { %v315_v61 = vpop.f32.mrf.mxu0 }
 0x1bc   :  { %v316_v62 = vadd.f32 %v339_v60, %v315_v61 }
 0x1bd   :  { %v391_v63 = vpop.f32.mrf.mxu0 }
 0x1be   :  { %320 = vst.msk [vmem:[#allocation5] sm:$0x3] %vm319_vm2, %v316_v62 }
 0x1bf   :  { %429 = shalt.err (!%p426_p9)
}
 0x1c0   :  { %330 = dma.vmem_to_hbm [thread:$0]  %s328_s9, 32, %s567_s5, [#allocation4]  }
 0x1c1   :  { %440 = dma.done.wait [#allocation4], 32  }
 0x1c2   :  { %441 = vsyncadd [#allocation4], 4294967264 }
 0x1c3   :  { %334 = vsyncpa [#allocation3], 1 }
 0x1c4   :  { %335 = vsyncpa [#allocation4], 1 }

</bundles_post_ra>
